<compile_context>
chip_gen: v7x
topology: tpu7x:2x2x1
jax: 0.10.0
libtpu: 0.0.40
codegen_flags: <defaults>
</compile_context>

<pallas_src>
import functools

import jax
import jax.numpy as jnp
from jax.experimental import pallas as pl
from jax.experimental.pallas import tpu as pltpu


def _round_up(x, m):
    return (x + m - 1) // m * m


@functools.lru_cache(maxsize=None)
def _build_fused_mlp(B_pad, tm, n_tables, numeric_size, V_pad, hidden,
                     dot_dtype_name):
    """One pallas_call: one-hot embedding gather + linear1 + ReLU + linear2 +
    sigmoid, tiled over the batch with a parallel grid."""
    dot_dtype = jnp.dtype(dot_dtype_name)
    n_pad = _round_up(numeric_size, 8)
    n_off = V_pad                      # start of the numeric rows of w1
    b1_row = V_pad + n_pad             # row holding b1
    w2_row = b1_row + 8                # row holding w2^T; b2 sits at [w2_row+1, 0]
    rows = w2_row + 8                  # total rows of the packed weight array
    nb = B_pad // tm

    def kernel(idx_ref, num_ref, w_ref, o_ref):
        idx = idx_ref[...]                                          # (tm, n_tables) i32
        lanes = jax.lax.broadcasted_iota(jnp.int32, (tm, V_pad), 1)
        # Combined one-hot over all embedding tables.  Indices were pre-offset
        # per table in the wrapper, so each table's 1 lands in a disjoint lane
        # range; summing the masks is an exact OR.
        onehot = (lanes == idx[:, 0:1]).astype(dot_dtype)
        for t in range(1, n_tables):
            onehot = onehot + (lanes == idx[:, t:t + 1]).astype(dot_dtype)

        # Single fused MXU pass for every embedding segment: M row-blocks are
        # the pre-folded table_t @ w1_segment_t products.
        m = w_ref[0:V_pad, :].astype(dot_dtype)
        wn = w_ref[n_off:n_off + numeric_size, :].astype(dot_dtype)
        h = jnp.dot(onehot, m, preferred_element_type=jnp.float32)
        h = h + jnp.dot(num_ref[...].astype(dot_dtype), wn,
                        preferred_element_type=jnp.float32)
        h = jnp.maximum(h + w_ref[b1_row:b1_row + 1, :], 0.0)      # bias + ReLU (f32)

        # linear2 (hidden -> 1): VPU multiply + lane reduction, no N=1 matmul.
        y = jnp.sum(h * w_ref[w2_row:w2_row + 1, :], axis=-1, keepdims=True)
        y = y + w_ref[w2_row + 1:w2_row + 2, 0:1]                   # + b2
        o_ref[...] = jax.nn.sigmoid(y)

    cost = pl.CostEstimate(
        flops=2 * B_pad * (V_pad + numeric_size + 2) * hidden,
        transcendentals=B_pad,
        bytes_accessed=4 * (rows * hidden
                            + B_pad * (n_tables + numeric_size + 1)),
    )

    return pl.pallas_call(
        kernel,
        out_shape=jax.ShapeDtypeStruct((B_pad, 1), jnp.float32),
        grid=(nb,),
        in_specs=[
            pl.BlockSpec((tm, n_tables), lambda i: (i, 0)),       # per-row indices
            pl.BlockSpec((tm, numeric_size), lambda i: (i, 0)),   # numeric features
            pl.BlockSpec((rows, hidden), lambda i: (0, 0)),       # packed weights (resident)
        ],
        out_specs=pl.BlockSpec((tm, 1), lambda i: (i, 0)),
        compiler_params=pltpu.CompilerParams(
            dimension_semantics=("parallel",)),
        cost_estimate=cost,
    )


def pack_params(params, numeric_size):
    """Fold tables into M = table_t @ w1_segment_t and pack every parameter into
    one lane-dense (rows, hidden) f32 array with 8-row-aligned sections.
    Pure parameter transform — forward math is unchanged."""
    E = params["emb_cat5"].shape[-1]
    w1 = jnp.asarray(params["w1"], jnp.float32)
    hidden = w1.shape[1]
    tables = [params["emb_cat5"]] + list(params["emb_cats"])

    hp = jax.lax.Precision.HIGHEST
    fused, bases, off, base = [], [], 0, 0
    for t in tables:
        t = jnp.asarray(t, jnp.float32)
        fused.append(jnp.dot(t, w1[off:off + E, :], precision=hp))
        bases.append(base)
        off += E
        base += t.shape[0]
    V_total = base
    V_pad = _round_up(V_total, 8)
    n_pad = _round_up(numeric_size, 8)

    m = jnp.concatenate(fused, axis=0)
    m = jnp.pad(m, ((0, V_pad - V_total), (0, 0)))
    wn = jnp.pad(w1[off:off + numeric_size, :],
                 ((0, n_pad - numeric_size), (0, 0)))
    b1_blk = jnp.zeros((8, hidden), jnp.float32).at[0, :].set(
        jnp.asarray(params["b1"], jnp.float32).reshape(-1))
    w2_blk = jnp.zeros((8, hidden), jnp.float32).at[0, :].set(
        jnp.asarray(params["w2"], jnp.float32).reshape(-1))
    w2_blk = w2_blk.at[1, 0].set(
        jnp.asarray(params["b2"], jnp.float32).reshape(()))
    w_all = jnp.concatenate([m, wn, b1_blk, w2_blk], axis=0)
    return w_all, tuple(bases), V_pad


def custom_model_forward(params, numeric_data, cat_data, cat5_data,
                         dot_dtype=jnp.float32):
    """Equivalent of CustomModel.forward (B=1 contract), generalized over batch."""
    numeric_data = jnp.asarray(numeric_data, jnp.float32)
    B, numeric_size = numeric_data.shape
    hidden = params["w1"].shape[1]
    n_tables = 1 + len(params["emb_cats"])

    w_all, bases, V_pad = pack_params(params, numeric_size)

    cat5 = jnp.asarray(cat5_data, jnp.int32).reshape(B, 1)
    cat = jnp.asarray(cat_data, jnp.int32).reshape(B, n_tables - 1)
    idx = (jnp.concatenate([cat5, cat], axis=1)
           + jnp.asarray(bases, jnp.int32)[None, :])

    # Batch tiling: whole-array block for small B, 128-row tiles otherwise.
    if B <= 128:
        tm, B_pad = B, B
    else:
        tm = 128
        B_pad = _round_up(B, tm)
    if B_pad != B:
        idx = jnp.pad(idx, ((0, B_pad - B), (0, 0)))
        numeric_data = jnp.pad(numeric_data, ((0, B_pad - B), (0, 0)))

    fwd = _build_fused_mlp(B_pad, tm, n_tables, numeric_size, V_pad, hidden,
                           jnp.dtype(dot_dtype).name)
    return fwd(idx, numeric_data, w_all)[:B]


def init_params(key, numeric_size, vocab_size, embedding_dim, category_sizes,
                hidden=128):
    """Parameters in the original module's (math) layout."""
    n_cat = len(category_sizes)
    in_dim = numeric_size + embedding_dim * (1 + n_cat)
    keys = jax.random.split(key, 4 + n_cat)
    return {
        "emb_cat5": jax.random.normal(keys[0], (vocab_size, embedding_dim),
                                      jnp.float32),
        "emb_cats": [
            jax.random.normal(keys[1 + i], (sz, embedding_dim), jnp.float32)
            for i, sz in enumerate(category_sizes)
        ],
        "w1": jax.random.normal(keys[1 + n_cat], (in_dim, hidden), jnp.float32)
              / jnp.sqrt(float(in_dim)),
        "b1": jax.random.normal(keys[2 + n_cat], (hidden,), jnp.float32) * 0.1,
        "w2": jax.random.normal(keys[3 + n_cat], (hidden, 1), jnp.float32)
              / jnp.sqrt(float(hidden)),
        "b2": jnp.full((1,), 0.05, jnp.float32),
    }


def reference_forward(params, numeric_data, cat_data, cat5_data):
    """Pure-JAX replica of the original module math (embedding → cat → MLP)."""
    hp = jax.lax.Precision.HIGHEST
    numeric_data = jnp.asarray(numeric_data, jnp.float32)
    cat5_e = jnp.take(params["emb_cat5"],
                      jnp.asarray(cat5_data, jnp.int32).reshape(-1), axis=0)
    cat = jnp.asarray(cat_data, jnp.int32)
    cat_es = [jnp.take(t, cat[:, i], axis=0)
              for i, t in enumerate(params["emb_cats"])]
    x = jnp.concatenate([cat5_e] + cat_es + [numeric_data], axis=-1)
    h = jnp.maximum(jnp.dot(x, params["w1"], precision=hp) + params["b1"], 0.0)
    y = jnp.dot(h, params["w2"], precision=hp) + params["b2"]
    return jax.nn.sigmoid(y)


if __name__ == "__main__":
    numeric_size, vocab_size, embedding_dim = 16, 20, 8
    category_sizes = [5, 6, 7]

    key = jax.random.PRNGKey(0)
    kp, kd = jax.random.split(key)
    params = init_params(kp, numeric_size, vocab_size, embedding_dim,
                         category_sizes)

    def make_inputs(k, B):
        kn, kc, k5 = jax.random.split(k, 3)
        numeric = jax.random.normal(kn, (B, numeric_size), jnp.float32)
        cat = jnp.stack(
            [jax.random.randint(jax.random.fold_in(kc, i), (B,), 0, sz)
             for i, sz in enumerate(category_sizes)], axis=1).astype(jnp.int32)
        cat5 = jax.random.randint(k5, (B,), 0, vocab_size).astype(jnp.int32)
        return numeric, cat, cat5

    fwd = jax.jit(custom_model_forward, static_argnames=("dot_dtype",))

    # 1) Original module contract: batch = 1.
    n1, c1, c51 = make_inputs(jax.random.fold_in(kd, 0), 1)
    out1 = jax.block_until_ready(fwd(params, n1, c1, c51))
    ref1 = reference_forward(params, n1, c1, c51)
    assert out1.shape == (1, 1)
    assert jnp.allclose(out1, ref1, atol=5e-3), (out1, ref1)

    # 2) Batched path: grid over 128-row tiles, dimension_semantics=("parallel",).
    nB, cB, c5B = make_inputs(jax.random.fold_in(kd, 1), 256)
    outB = jax.block_until_ready(fwd(params, nB, cB, c5B))
    refB = reference_forward(params, nB, cB, c5B)
    assert outB.shape == (256, 1)
    assert jnp.allclose(outB, refB, atol=5e-3), float(jnp.max(jnp.abs(outB - refB)))

    # 3) bf16 MXU operands (single-pass MXU on v5e/v6e), f32 accumulation/epilogue.
    outBf = jax.block_until_ready(fwd(params, nB, cB, c5B,
                                      dot_dtype=jnp.bfloat16))
    assert jnp.allclose(outBf, refB, atol=3e-2), float(jnp.max(jnp.abs(outBf - refB)))

    print("KERNEL_OK")
</pallas_src>

<mosaic_0001>
module attributes {stable_mosaic.version = 11 : i64} {
  func.func @kernel(%arg0: i32, %arg1: memref<1x4xi32, #tpu.memory_space<vmem>>, %arg2: memref<1x16xf32, #tpu.memory_space<vmem>>, %arg3: memref<72x128xf32, #tpu.memory_space<vmem>>, %arg4: memref<1x1xf32, #tpu.memory_space<vmem>>) attributes {dimension_semantics = [#tpu.dimension_semantics<parallel>], iteration_bounds = array<i64: 1>, scalar_prefetch = 0 : i64, scratch_operands = 0 : i64, tpu.core_type = #tpu.core_type<tc>, window_params = [{transform_indices = @transform_0, window_bounds = array<i64: 1, 4>}, {transform_indices = @transform_1, window_bounds = array<i64: 1, 16>}, {pipeline_mode = #tpu.pipeline_mode<synchronous>, transform_indices = @transform_2, window_bounds = array<i64: 72, 128>}, {transform_indices = @transform_3, window_bounds = array<i64: 1, 1>}]} {
    %c0 = arith.constant 0 : index
    %c0_0 = arith.constant 0 : index
    %0 = vector.load %arg1[%c0, %c0_0] : memref<1x4xi32, #tpu.memory_space<vmem>>, vector<1x4xi32>
    %1 = tpu.iota {dimensions = array<i32: 1>} : vector<1x40xi32>
    %2 = vector.extract_strided_slice %0 {offsets = [0, 0], sizes = [1, 1], strides = [1, 1]} : vector<1x4xi32> to vector<1x1xi32>
    %3 = vector.broadcast %2 : vector<1x1xi32> to vector<1x40xi32>
    %4 = arith.cmpi eq, %1, %3 : vector<1x40xi32>
    %5 = arith.extui %4 : vector<1x40xi1> to vector<1x40xi32>
    %6 = arith.sitofp %5 : vector<1x40xi32> to vector<1x40xf32>
    %7 = vector.extract_strided_slice %0 {offsets = [0, 1], sizes = [1, 1], strides = [1, 1]} : vector<1x4xi32> to vector<1x1xi32>
    %8 = vector.broadcast %7 : vector<1x1xi32> to vector<1x40xi32>
    %9 = arith.cmpi eq, %1, %8 : vector<1x40xi32>
    %10 = arith.extui %9 : vector<1x40xi1> to vector<1x40xi32>
    %11 = arith.sitofp %10 : vector<1x40xi32> to vector<1x40xf32>
    %12 = arith.addf %6, %11 : vector<1x40xf32>
    %13 = vector.extract_strided_slice %0 {offsets = [0, 2], sizes = [1, 1], strides = [1, 1]} : vector<1x4xi32> to vector<1x1xi32>
    %14 = vector.broadcast %13 : vector<1x1xi32> to vector<1x40xi32>
    %15 = arith.cmpi eq, %1, %14 : vector<1x40xi32>
    %16 = arith.extui %15 : vector<1x40xi1> to vector<1x40xi32>
    %17 = arith.sitofp %16 : vector<1x40xi32> to vector<1x40xf32>
    %18 = arith.addf %12, %17 : vector<1x40xf32>
    %19 = vector.extract_strided_slice %0 {offsets = [0, 3], sizes = [1, 1], strides = [1, 1]} : vector<1x4xi32> to vector<1x1xi32>
    %20 = vector.broadcast %19 : vector<1x1xi32> to vector<1x40xi32>
    %21 = arith.cmpi eq, %1, %20 : vector<1x40xi32>
    %22 = arith.extui %21 : vector<1x40xi1> to vector<1x40xi32>
    %23 = arith.sitofp %22 : vector<1x40xi32> to vector<1x40xf32>
    %24 = arith.addf %18, %23 : vector<1x40xf32>
    %c0_1 = arith.constant 0 : index
    %c0_2 = arith.constant 0 : index
    %25 = vector.load %arg3[%c0_1, %c0_2] : memref<72x128xf32, #tpu.memory_space<vmem>>, vector<40x128xf32>
    %c40 = arith.constant 40 : index
    %c0_3 = arith.constant 0 : index
    %26 = vector.load %arg3[%c40, %c0_3] : memref<72x128xf32, #tpu.memory_space<vmem>>, vector<16x128xf32>
    %cst = arith.constant dense<0.000000e+00> : vector<1x128xf32>
    %27 = tpu.matmul %24, %25, %cst {dimension_numbers = #tpu.dot_dimension_numbers<[1], [0], [0], [1], [0, 0, 1, 1], [], []>} : vector<1x40xf32>, vector<40x128xf32>, vector<1x128xf32> -> vector<1x128xf32>
    %c0_4 = arith.constant 0 : index
    %c0_5 = arith.constant 0 : index
    %28 = vector.load %arg2[%c0_4, %c0_5] : memref<1x16xf32, #tpu.memory_space<vmem>>, vector<1x16xf32>
    %cst_6 = arith.constant dense<0.000000e+00> : vector<1x128xf32>
    %29 = tpu.matmul %28, %26, %cst_6 {dimension_numbers = #tpu.dot_dimension_numbers<[1], [0], [0], [1], [0, 0, 1, 1], [], []>} : vector<1x16xf32>, vector<16x128xf32>, vector<1x128xf32> -> vector<1x128xf32>
    %30 = arith.addf %27, %29 : vector<1x128xf32>
    %c56 = arith.constant 56 : index
    %c0_7 = arith.constant 0 : index
    %31 = vector.load %arg3[%c56, %c0_7] : memref<72x128xf32, #tpu.memory_space<vmem>>, vector<1x128xf32>
    %32 = arith.addf %30, %31 : vector<1x128xf32>
    %cst_8 = arith.constant 0.000000e+00 : f32
    %33 = vector.broadcast %cst_8 : f32 to vector<1x128xf32>
    %34 = arith.maximumf %32, %33 : vector<1x128xf32>
    %c64 = arith.constant 64 : index
    %c0_9 = arith.constant 0 : index
    %35 = vector.load %arg3[%c64, %c0_9] : memref<72x128xf32, #tpu.memory_space<vmem>>, vector<1x128xf32>
    %36 = arith.mulf %34, %35 : vector<1x128xf32>
    %cst_10 = arith.constant dense<0.000000e+00> : vector<1xf32>
    %37 = vector.multi_reduction <add>, %36, %cst_10 [1] : vector<1x128xf32> to vector<1xf32>
    %38 = vector.shape_cast %37 : vector<1xf32> to vector<1x1xf32>
    %c65 = arith.constant 65 : index
    %c0_11 = arith.constant 0 : index
    %39 = vector.load %arg3[%c65, %c0_11] : memref<72x128xf32, #tpu.memory_space<vmem>>, vector<1x1xf32>
    %40 = arith.addf %38, %39 : vector<1x1xf32>
    %41 = arith.negf %40 : vector<1x1xf32>
    %42 = math.exp %41 : vector<1x1xf32>
    %cst_12 = arith.constant 1.000000e+00 : f32
    %43 = vector.broadcast %cst_12 : f32 to vector<1x1xf32>
    %44 = arith.addf %43, %42 : vector<1x1xf32>
    %45 = arith.divf %43, %44 : vector<1x1xf32>
    %c0_13 = arith.constant 0 : index
    %c0_14 = arith.constant 0 : index
    %46 = vector.load %arg4[%c0_13, %c0_14] : memref<1x1xf32, #tpu.memory_space<vmem>>, vector<1x1xf32>
    tpu.vector_store %arg4[%c0_13, %c0_14], %45 {strides = array<i32>} : memref<1x1xf32, #tpu.memory_space<vmem>>, vector<1x1xf32>,
    return
  }
  func.func @transform_0(%arg0: i32) -> (i32, i32) {
    %c0_i32 = arith.constant 0 : i32
    %c0_i32_0 = arith.constant 0 : i32
    return %arg0, %c0_i32 : i32, i32
  }
  func.func @transform_1(%arg0: i32) -> (i32, i32) {
    %c0_i32 = arith.constant 0 : i32
    %c0_i32_0 = arith.constant 0 : i32
    return %arg0, %c0_i32 : i32, i32
  }
  func.func @transform_2(%arg0: i32) -> (i32, i32) {
    %c0_i32 = arith.constant 0 : i32
    %c0_i32_0 = arith.constant 0 : i32
    %c0_i32_1 = arith.constant 0 : i32
    return %c0_i32, %c0_i32_0 : i32, i32
  }
  func.func @transform_3(%arg0: i32) -> (i32, i32) {
    %c0_i32 = arith.constant 0 : i32
    %c0_i32_0 = arith.constant 0 : i32
    return %arg0, %c0_i32 : i32, i32
  }
}

</mosaic_0001>

<bundles_post_ra>
// kernel: custom_model_forward.1
= control target key start
LH: loop header
LB: loop body
LE: loop exit
PB: predicated region body
PF: predicated region fallthrough
CT: control target
= control target key end

     0   :  { %v336_v1 = vmov 0   ;;  %v337_v2 = vmov 2   ;;  %s412_s0 = inlined_call_operand.vmem [shape: s32[1,4], index: 0, kind: input, shape index: {}]   ;;  %s413_s1 = inlined_call_operand.vmem [shape: f32[1,16], index: 1, kind: input, shape index: {}]   ;;  %s414_s2 = inlined_call_operand.vmem [shape: f32[72,128], index: 2, kind: input, shape index: {}]   ;;  %s415_s3 = inlined_call_operand.hbm [shape: f32[1,1], index: 3, kind: output, shape index: {}]  }
   0x1   :  { %v15_v0 = vld [vmem:[%s412_s0] sm:$0x1]  ;;  %303 = vset.pattern.permute.xlu0 %v336_v1  ;;  %305 = vset.pattern.permute.xlu1 %v337_v2 }
   0x2   :  { %8 = vsyncpa [#allocation3], 0  ;;  %19 = vperm.xlu0 %303, %v15_v0   ;;  %40 = vperm.xlu1 %305, %v15_v0   ;;  %v61_v3 = vld [vmem:[%s414_s2] sm:$0xff]  ;;  %v62_v4 = vld [vmem:[%s414_s2 + $0x8] sm:$0xff]  ;;  %v338_v5 = vmov 1   ;;  %v339_v6 = vmov 3   ;;  %v16_v18 = vlaneseq }
   0x3   :  { %v290_v7 = vpack.c.bf16 %v62_v4, %v61_v3  ;;  %v340_v8 = vmov 0.0|0.0   ;;  %v63_v9 = vld [vmem:[%s414_s2 + $0x10] sm:$0xff]  ;;  %v64_v10 = vld [vmem:[%s414_s2 + $0x18] sm:$0xff]  ;;  %v66_v12 = vld [vmem:[%s414_s2 + $0x28] sm:$0xff]  ;;  %v341_v15 = vmov 0.0   ;;  %vm342_vm0 = vmmov 0  }
   0x4   :  { %289 = vmatprep.subr.bf16.mxu1 %v340_v8  ;;  %286 = vmatprep.subr.bf16.mxu0 %v340_v8  ;;  %v293_v11 = vpack.c.bf16 %v64_v10, %v63_v9  ;;  %v67_v13 = vld [vmem:[%s414_s2 + $0x30] sm:$0xff]  ;;  %v68_v16 = vld [vmem:[%s413_s1] sm:$0x1]  ;;  %vm69_vm1 = vcmask 130048   ;;  %v22_v19 = vshrl.u32 %v16_v18, 7  ;;  %v17_v23 = vand.u32 127, %v16_v18 }
   0x5   :  { %291 = vmatpush3.bf16.msra.mxu1 %v290_v7  ;;  %v287_v14 = vpack.c.bf16 %v67_v13, %v66_v12  ;;  %270 = vmatprep.mubr.msk.f32.mxu0 %vm342_vm0, %v341_v15  ;;  %v65_v17 = vld [vmem:[%s414_s2 + $0x20] sm:$0xff]  ;;  %vm143_vm6 = vcmask 326656   ;;  %v217_v40 = vld [vmem:[%s414_s2 + $0x38] sm:$0x1]  ;;  %vm222_vm7 = vcmask 1040384   ;;  %s343_s7 = smov [#allocation2]  }
   0x6   :  { %304 = vset.pattern.permute.xlu0 %v338_v5  ;;  %306 = vset.pattern.permute.xlu1 %v339_v6  ;;  %v23_v20 = vsub.s32 0, %v22_v19  ;;  %v220_v44 = vld [vmem:[%s414_s2 + $0x40] sm:$0x1]  ;;  %v226_v48 = vld [vmem:[%s414_s2 + $0x41] sm:$0x1]  ;;  %s242_s8 = sshll.u32 %s343_s7, 4  ;;  %s243_s8 = int_to_ptr.vmem [resolvable:$true] %s242_s8 }
   0x7   :  { %29 = vperm.xlu0 %304, %v15_v0   ;;  %51 = vperm.xlu1 %306, %v15_v0   ;;  %vm234_vm8 = vcmask 0   ;;  %s312_s9 = scalar_lea.vmem %s243_s8, 16  ;;  %s316_s10 = scalar_lea.vmem %s243_s8, 32 }
   0x8   :  { %292 = vmatprep.subr.bf16.mxu1 %v340_v8  ;;  %288 = vmatpush3.bf16.msra.mxu0 %v287_v14  ;;  %p313_p0 = scmp.ne.s32.totalorder %s243_s8, %s312_s9  ;;  %p317_p1 = scmp.lt.s32.totalorder %s243_s8, %s243_s8 }
   0x9   :  { %294 = vmatpush3.bf16.msra.mxu1 %v293_v11  ;;  %283 = vmatprep.mubr.msk.f32.mxu1 %vm342_vm0, %v341_v15  ;;  %p318_p2 = scmp.lt.s32.totalorder %s316_s10, %s312_s9 }
   0xa   :  { %281 = vmatprep.subr.mxu1 %v341_v15 }
   0xb   :  { %307 = vset.pattern.permute.xlu0 %v339_v6  ;;  %271 = vmatmul.mubr.msk.f32.vlgmr.msra.gmra.mrb[0].mxu0 %vm69_vm1, %v68_v16  ;;  %p319_p3 = por %p318_p2, %p317_p1 }
   0xd   :  { %282 = vmatpush3.msra.mxu1 %v65_v17  ;;  %p320_p4 = pnand %p319_p3, %p313_p0 }
  0x81   :  { %v20_v21 = vpop.permute.xlu0 %19  ;;  %v41_v22 = vpop.permute.xlu1 %40 }
  0x82   :  { %v24_v24 = vrot.slane %v20_v21, %v23_v20  ;;  %v45_v25 = vrot.slane %v41_v22, %v23_v20 }
  0x84   :  { %vm25_vm2 = vcmp.eq.s32.totalorder %v17_v23, %v24_v24  ;;  %vm46_vm3 = vcmp.eq.s32.totalorder %v17_v23, %v45_v25 }
  0x85   :  { %v250_v30 = vsel %vm25_vm2, 1.0, %v341_v15  ;;  %v252_v33 = vsel %vm46_vm3, 1.0, %v341_v15 }
  0x86   :  { %v30_v26 = vpop.permute.xlu0 %29  ;;  %v52_v27 = vpop.permute.xlu1 %51 }
  0x87   :  { %v34_v28 = vrot.slane %v30_v26, %v23_v20  ;;  %v56_v29 = vrot.slane %v52_v27, %v23_v20 }
  0x89   :  { %vm35_vm4 = vcmp.eq.s32.totalorder %v17_v23, %v34_v28  ;;  %vm57_vm5 = vcmp.eq.s32.totalorder %v17_v23, %v56_v29 }
  0x8a   :  { %v251_v31 = vsel %vm35_vm4, 1.0, %v341_v15  ;;  %v253_v34 = vsel %vm57_vm5, 1.0, %v341_v15 }
  0x8b   :  { %v38_v32 = vadd.f32 %v251_v31, %v250_v30 }
  0x8d   :  { %v49_v35 = vadd.f32 %v252_v33, %v38_v32 }
  0x8f   :  { %v60_v36 = vadd.f32 %v253_v34, %v49_v35 }
  0x91   :  { %284 = vmatmul.mubr.msk.f32.vlgmr.msra.gmra.mrb[0].mxu1 %vm143_vm6, %v60_v36 }
  0xde   :  { %v139_v37 = vpop.f32.mrb[0].mxu0 }
  0xdf   :  { %v272_v38 = vpop.f32.mrb[1].mxu0 }
 0x164   :  { %v213_v39 = vpop.f32.mrb[0].mxu1 }
 0x165   :  { %v214_v41 = vadd.f32 %v213_v39, %v139_v37  ;;  %v285_v42 = vpop.f32.mrb[1].mxu1 }
 0x167   :  { %v218_v43 = vadd.f32 %v217_v40, %v214_v41 }
 0x169   :  { %v219_v45 = vmax.f32 %v218_v43, 0.0 }
 0x16b   :  { %v221_v46 = vmul.f32 %v220_v44, %v219_v45 }
 0x16d   :  { %v223_v47 = vsel %vm222_vm7, %v221_v46, 0.0 }
 0x16e   :  { %224 = vadd.xlane.f32.xlu1 %v223_v47 }
 0x1fb   :  { %v225_v49 = vpop.xlane.xlu1 %224 }
 0x1fc   :  { %v227_v50 = vadd.f32 %v226_v48, %v225_v49 }
 0x1fe   :  { %v256_v51 = vmul.f32 -1.442695, %v227_v50 }
 0x200   :  { %308 = vpow2.f32 %v256_v51 }
 0x20a   :  { %v309_v52 = vpop.eup %308 }
 0x20b   :  { %v231_v53 = vadd.f32 1.0, %v309_v52 }
 0x20d   :  { %310 = vrcp.f32 %v231_v53 }
 0x217   :  { %v311_v54 = vpop.eup %310 }
 0x218   :  { %235 = vst.msk [vmem:[#allocation2] sm:$0x1] %vm234_vm8, %v311_v54 }
 0x219   :  { %323 = shalt.err (!%p320_p4)
}
 0x21a   :  { %s324_s12 = scalar_lea.hbm %s415_s3, 16 }
 0x21b   :  { %p325_p5 = scmp.ne.s32.totalorder %s415_s3, %s324_s12  ;;  %p328_p6 = scmp.lt.u32.totalorder %s324_s12, %s415_s3 }
 0x21d   :  { %p330_p7 = pnand %p328_p6, %p325_p5 }
 0x21f   :  { %333 = shalt.err (!%p330_p7)
}
 0x220   :  { %245 = dma.vmem_to_hbm [thread:$0]  %s243_s8, 16, %s415_s3, [#allocation3]  }
 0x221   :  { %334 = dma.done.wait [#allocation3], 16  }
 0x222   :  { %335 = vsyncadd [#allocation3], 4294967280 }
 0x223   :  { %249 = vsyncpa [#allocation3], 1 }

</bundles_post_ra>
